<compile_context>
chip_gen: v7x
topology: tpu7x:2x2x1
jax: 0.10.0
libtpu: 0.0.40
codegen_flags: <defaults>
</compile_context>

<pallas_src>
import functools

import jax
import jax.numpy as jnp
from jax import lax
from jax.experimental import pallas as pl
from jax.experimental.pallas import tpu as pltpu


# ---------------------------------------------------------------------------
# Kernels
# ---------------------------------------------------------------------------

def _conv1x1_kernel(x_ref, w_ref, b_ref, o_ref, *, chunk):
    """One grid step of the main path.

    x_ref : (1, Cin, S_TILE, 128)  VMEM
    w_ref : (Cout, Cin)            SMEM  (scalar reads)
    b_ref : (Cout,)                SMEM  (scalar reads)
    o_ref : (1, Cout, S_TILE, 128) VMEM
    """
    cin = x_ref.shape[1]
    cout = o_ref.shape[1]
    s_tile = x_ref.shape[2]
    out_dtype = o_ref.dtype

    def do_chunk(s0, rows):
        # Load the Cin channel rows of this sublane chunk once; they stay in
        # vregs across all Cout outputs (per-row upcast, no whole-tile cast).
        xs = [x_ref[0, ci, pl.ds(s0, rows), :].astype(jnp.float32)
              for ci in range(cin)]
        for co in range(cout):
            acc = xs[0] * w_ref[co, 0]
            for ci in range(1, cin):
                acc = acc + xs[ci] * w_ref[co, ci]
            # Bias + output cast fused into the single store per output vreg.
            o_ref[0, co, pl.ds(s0, rows), :] = (acc + b_ref[co]).astype(out_dtype)

    n_full = s_tile // chunk
    if n_full > 0:
        if n_full <= 8:
            # Fully static offsets -> aligned loads/stores, fully unrolled.
            for c in range(n_full):
                do_chunk(c * chunk, chunk)
        else:
            def body(c, carry):
                do_chunk(pl.multiple_of(c * chunk, chunk), chunk)
                return carry
            lax.fori_loop(0, n_full, body, 0, unroll=8)

    tail = s_tile - n_full * chunk
    if tail > 0:
        do_chunk(n_full * chunk, tail)


def _conv1x1_ragged_kernel(x_ref, w_ref, b_ref, o_ref):
    """Fallback when HW is not a multiple of 128 (block last dim == full HW).

    x_ref : (1, Cin, HW) VMEM ; w_ref/b_ref in SMEM ; o_ref : (1, Cout, HW).
    """
    cin = x_ref.shape[1]
    cout = o_ref.shape[1]
    xs = [x_ref[0, pl.ds(ci, 1), :].astype(jnp.float32) for ci in range(cin)]
    for co in range(cout):
        acc = xs[0] * w_ref[co, 0]
        for ci in range(1, cin):
            acc = acc + xs[ci] * w_ref[co, ci]
        o_ref[0, pl.ds(co, 1), :] = (acc + b_ref[co]).astype(o_ref.dtype)
    # TODO(synk): ragged-HW path is not chunk-tiled; fine for small spatial sizes.


# ---------------------------------------------------------------------------
# Tiling helpers
# ---------------------------------------------------------------------------

def _pick_s_tile(S, max_s):
    """Sublane-tile (rows of 128 lanes) per grid step."""
    if S <= max_s:
        return S
    best = None
    t = 8
    while t <= max_s:
        if S % t == 0:
            best = t
        t += 8
    # No multiple-of-8 divisor <= max_s: take the whole axis (block == full dim
    # is always legal); VMEM stays small for realistic shapes.
    return best if best is not None else S


def _pick_chunk(s_tile, cin):
    """Sublane rows per inner chunk: keep cin rows (~<=16 f32 vregs) + acc in regs."""
    budget = max(8, ((16 * 8) // max(cin, 1)) // 8 * 8)
    if s_tile <= budget:
        return s_tile
    for t in range(budget, 7, -8):
        if s_tile % t == 0:
            return t
    return budget


# ---------------------------------------------------------------------------
# Wrapper
# ---------------------------------------------------------------------------

def _conv1x1_ragged(x_nchw, w_mat, b_vec):
    N, Cin, H, W = x_nchw.shape
    Cout = w_mat.shape[0]
    HW = H * W
    x3 = x_nchw.reshape(N, Cin, HW)
    out3 = pl.pallas_call(
        _conv1x1_ragged_kernel,
        out_shape=jax.ShapeDtypeStruct((N, Cout, HW), x_nchw.dtype),
        grid_spec=pltpu.PrefetchScalarGridSpec(
            num_scalar_prefetch=0,
            grid=(N,),
            in_specs=[
                pl.BlockSpec((1, Cin, HW), lambda n: (n, 0, 0)),
                pl.BlockSpec(memory_space=pltpu.MemorySpace.SMEM),
                pl.BlockSpec(memory_space=pltpu.MemorySpace.SMEM),
            ],
            out_specs=pl.BlockSpec((1, Cout, HW), lambda n: (n, 0, 0)),
        ),
        compiler_params=pltpu.CompilerParams(
            dimension_semantics=("parallel",),
        ),
    )(x3, w_mat, b_vec)
    return out3.reshape(N, Cout, H, W)


def conv1x1_pallas(x_nchw, weight, bias, *, max_hw_tile=32768):
    """1x1 Conv2d forward (PyTorch OutLayer semantics).

    x_nchw : (N, Cin, H, W)
    weight : (Cout, Cin, 1, 1)   (PyTorch Conv2d weight layout)
    bias   : (Cout,)
    returns: (N, Cout, H, W)
    """
    N, Cin, H, W = x_nchw.shape
    Cout = weight.shape[0]
    HW = H * W
    itemsize = jnp.dtype(x_nchw.dtype).itemsize

    w_mat = weight.reshape(Cout, Cin).astype(jnp.float32)   # SMEM scalars
    b_vec = bias.reshape(Cout).astype(jnp.float32)          # SMEM scalars

    if HW % 128 != 0:
        # Rare ragged-spatial path: no jnp.pad / output slice (extra HBM traffic).
        return _conv1x1_ragged(x_nchw, w_mat, b_vec)

    S = HW // 128
    x4 = x_nchw.reshape(N, Cin, S, 128)          # free reshape, no transpose

    max_s = max(8, max_hw_tile // 128)           # 32768 lanes -> 256 sublane rows
    s_tile = _pick_s_tile(S, max_s)

    # Keep >= 4 total grid steps (>= 2 per v7x TensorCore) as long as each step
    # still moves enough HBM traffic (~>= 0.5 MiB) to hide the fixed step cost.
    def bytes_per_step(t):
        return (Cin + Cout) * t * 128 * itemsize

    num_j = S // s_tile
    while (N * num_j < 4 and s_tile % 16 == 0
           and bytes_per_step(s_tile // 2) >= (512 << 10)):
        s_tile //= 2
        num_j = S // s_tile

    chunk = _pick_chunk(s_tile, Cin)
    grid = (N, num_j)

    cost = pl.CostEstimate(
        flops=2 * N * HW * Cin * Cout,
        transcendentals=0,
        bytes_accessed=N * HW * (Cin + Cout) * itemsize + (Cout * Cin + Cout) * 4,
    )

    kernel = functools.partial(_conv1x1_kernel, chunk=chunk)

    out4 = pl.pallas_call(
        kernel,
        out_shape=jax.ShapeDtypeStruct((N, Cout, S, 128), x_nchw.dtype),
        grid_spec=pltpu.PrefetchScalarGridSpec(
            num_scalar_prefetch=0,
            grid=grid,
            in_specs=[
                pl.BlockSpec((1, Cin, s_tile, 128), lambda n, j: (n, 0, j, 0)),
                pl.BlockSpec(memory_space=pltpu.MemorySpace.SMEM),
                pl.BlockSpec(memory_space=pltpu.MemorySpace.SMEM),
            ],
            out_specs=pl.BlockSpec((1, Cout, s_tile, 128), lambda n, j: (n, 0, j, 0)),
        ),
        compiler_params=pltpu.CompilerParams(
            dimension_semantics=("parallel", "parallel"),
        ),
        cost_estimate=cost,
    )(x4, w_mat, b_vec)

    # Free reshape back to NCHW.
    return out4.reshape(N, Cout, H, W)


# ---------------------------------------------------------------------------
# Demo / correctness check
# ---------------------------------------------------------------------------

if __name__ == "__main__":
    # Small shapes consistent with the module: batch=2, in=4, out=8, 16x16.
    N, Cin, Cout, H, W = 2, 4, 8, 16, 16

    key = jax.random.PRNGKey(0)
    kx, kw, kb = jax.random.split(key, 3)

    x = jax.random.normal(kx, (N, Cin, H, W), dtype=jnp.float32)
    # Deterministic "Conv2d" params (PyTorch weight shape (Cout, Cin, 1, 1)).
    weight = jax.random.normal(kw, (Cout, Cin, 1, 1), dtype=jnp.float32) * 0.1
    bias = jax.random.normal(kb, (Cout,), dtype=jnp.float32) * 0.1

    out = conv1x1_pallas(x, weight, bias)
    out = jax.block_until_ready(out)

    # Reference check (pure JAX einsum over channels).
    ref = jnp.einsum("nchw,oc->nohw", x, weight.reshape(Cout, Cin)) \
        + bias[None, :, None, None]
    assert out.shape == (N, Cout, H, W)
    assert jnp.allclose(out, ref, atol=1e-5, rtol=1e-5)

    print("KERNEL_OK")
</pallas_src>

<mosaic_0001>
module attributes {stable_mosaic.version = 11 : i64} {
  func.func @_conv1x1_kernel(%arg0: i32, %arg1: i32, %arg2: memref<1x4x2x128xf32, #tpu.memory_space<vmem>>, %arg3: memref<8x4xf32, #tpu.memory_space<smem>>, %arg4: memref<8xf32, #tpu.memory_space<smem>>, %arg5: memref<1x8x2x128xf32, #tpu.memory_space<vmem>>) attributes {dimension_semantics = [#tpu.dimension_semantics<parallel>, #tpu.dimension_semantics<parallel>], iteration_bounds = array<i64: 2, 1>, scalar_prefetch = 0 : i64, scratch_operands = 0 : i64, tpu.core_type = #tpu.core_type<tc>, window_params = [{transform_indices = @transform_0, window_bounds = array<i64: 1, 4, 2, 128>}, {transform_indices = @transform_1, window_bounds = array<i64: 8, 4>}, {transform_indices = @transform_2, window_bounds = array<i64: 8>}, {transform_indices = @transform_3, window_bounds = array<i64: 1, 8, 2, 128>}]} {
    %c0 = arith.constant 0 : index
    %c0_0 = arith.constant 0 : index
    %c0_1 = arith.constant 0 : index
    %c0_2 = arith.constant 0 : index
    %0 = vector.load %arg2[%c0, %c0_0, %c0_1, %c0_2] : memref<1x4x2x128xf32, #tpu.memory_space<vmem>>, vector<1x1x2x128xf32>
    %1 = vector.shape_cast %0 : vector<1x1x2x128xf32> to vector<2x128xf32>
    %c0_3 = arith.constant 0 : index
    %c1 = arith.constant 1 : index
    %c0_4 = arith.constant 0 : index
    %c0_5 = arith.constant 0 : index
    %2 = vector.load %arg2[%c0_3, %c1, %c0_4, %c0_5] : memref<1x4x2x128xf32, #tpu.memory_space<vmem>>, vector<1x1x2x128xf32>
    %3 = vector.shape_cast %2 : vector<1x1x2x128xf32> to vector<2x128xf32>
    %c0_6 = arith.constant 0 : index
    %c2 = arith.constant 2 : index
    %c0_7 = arith.constant 0 : index
    %c0_8 = arith.constant 0 : index
    %4 = vector.load %arg2[%c0_6, %c2, %c0_7, %c0_8] : memref<1x4x2x128xf32, #tpu.memory_space<vmem>>, vector<1x1x2x128xf32>
    %5 = vector.shape_cast %4 : vector<1x1x2x128xf32> to vector<2x128xf32>
    %c0_9 = arith.constant 0 : index
    %c3 = arith.constant 3 : index
    %c0_10 = arith.constant 0 : index
    %c0_11 = arith.constant 0 : index
    %6 = vector.load %arg2[%c0_9, %c3, %c0_10, %c0_11] : memref<1x4x2x128xf32, #tpu.memory_space<vmem>>, vector<1x1x2x128xf32>
    %7 = vector.shape_cast %6 : vector<1x1x2x128xf32> to vector<2x128xf32>
    %c0_12 = arith.constant 0 : index
    %c0_13 = arith.constant 0 : index
    %8 = memref.load %arg3[%c0_12, %c0_13] : memref<8x4xf32, #tpu.memory_space<smem>>
    %9 = vector.broadcast %8 : f32 to vector<2x128xf32>
    %10 = arith.mulf %1, %9 : vector<2x128xf32>
    %c0_14 = arith.constant 0 : index
    %c1_15 = arith.constant 1 : index
    %11 = memref.load %arg3[%c0_14, %c1_15] : memref<8x4xf32, #tpu.memory_space<smem>>
    %12 = vector.broadcast %11 : f32 to vector<2x128xf32>
    %13 = arith.mulf %3, %12 : vector<2x128xf32>
    %14 = arith.addf %10, %13 : vector<2x128xf32>
    %c0_16 = arith.constant 0 : index
    %c2_17 = arith.constant 2 : index
    %15 = memref.load %arg3[%c0_16, %c2_17] : memref<8x4xf32, #tpu.memory_space<smem>>
    %16 = vector.broadcast %15 : f32 to vector<2x128xf32>
    %17 = arith.mulf %5, %16 : vector<2x128xf32>
    %18 = arith.addf %14, %17 : vector<2x128xf32>
    %c0_18 = arith.constant 0 : index
    %c3_19 = arith.constant 3 : index
    %19 = memref.load %arg3[%c0_18, %c3_19] : memref<8x4xf32, #tpu.memory_space<smem>>
    %20 = vector.broadcast %19 : f32 to vector<2x128xf32>
    %21 = arith.mulf %7, %20 : vector<2x128xf32>
    %22 = arith.addf %18, %21 : vector<2x128xf32>
    %c0_20 = arith.constant 0 : index
    %23 = memref.load %arg4[%c0_20] : memref<8xf32, #tpu.memory_space<smem>>
    %24 = vector.broadcast %23 : f32 to vector<2x128xf32>
    %25 = arith.addf %22, %24 : vector<2x128xf32>
    %c0_21 = arith.constant 0 : index
    %c0_22 = arith.constant 0 : index
    %c0_23 = arith.constant 0 : index
    %c0_24 = arith.constant 0 : index
    %26 = vector.load %arg5[%c0_21, %c0_22, %c0_23, %c0_24] : memref<1x8x2x128xf32, #tpu.memory_space<vmem>>, vector<1x1x2x128xf32>
    %27 = vector.shape_cast %26 : vector<1x1x2x128xf32> to vector<2x128xf32>
    %28 = vector.shape_cast %25 : vector<2x128xf32> to vector<1x1x2x128xf32>
    tpu.vector_store %arg5[%c0_21, %c0_22, %c0_23, %c0_24], %28 {strides = array<i32>} : memref<1x8x2x128xf32, #tpu.memory_space<vmem>>, vector<1x1x2x128xf32>,
    %c1_25 = arith.constant 1 : index
    %c0_26 = arith.constant 0 : index
    %29 = memref.load %arg3[%c1_25, %c0_26] : memref<8x4xf32, #tpu.memory_space<smem>>
    %30 = vector.broadcast %29 : f32 to vector<2x128xf32>
    %31 = arith.mulf %1, %30 : vector<2x128xf32>
    %c1_27 = arith.constant 1 : index
    %c1_28 = arith.constant 1 : index
    %32 = memref.load %arg3[%c1_27, %c1_28] : memref<8x4xf32, #tpu.memory_space<smem>>
    %33 = vector.broadcast %32 : f32 to vector<2x128xf32>
    %34 = arith.mulf %3, %33 : vector<2x128xf32>
    %35 = arith.addf %31, %34 : vector<2x128xf32>
    %c1_29 = arith.constant 1 : index
    %c2_30 = arith.constant 2 : index
    %36 = memref.load %arg3[%c1_29, %c2_30] : memref<8x4xf32, #tpu.memory_space<smem>>
    %37 = vector.broadcast %36 : f32 to vector<2x128xf32>
    %38 = arith.mulf %5, %37 : vector<2x128xf32>
    %39 = arith.addf %35, %38 : vector<2x128xf32>
    %c1_31 = arith.constant 1 : index
    %c3_32 = arith.constant 3 : index
    %40 = memref.load %arg3[%c1_31, %c3_32] : memref<8x4xf32, #tpu.memory_space<smem>>
    %41 = vector.broadcast %40 : f32 to vector<2x128xf32>
    %42 = arith.mulf %7, %41 : vector<2x128xf32>
    %43 = arith.addf %39, %42 : vector<2x128xf32>
    %c1_33 = arith.constant 1 : index
    %44 = memref.load %arg4[%c1_33] : memref<8xf32, #tpu.memory_space<smem>>
    %45 = vector.broadcast %44 : f32 to vector<2x128xf32>
    %46 = arith.addf %43, %45 : vector<2x128xf32>
    %c0_34 = arith.constant 0 : index
    %c1_35 = arith.constant 1 : index
    %c0_36 = arith.constant 0 : index
    %c0_37 = arith.constant 0 : index
    %47 = vector.load %arg5[%c0_34, %c1_35, %c0_36, %c0_37] : memref<1x8x2x128xf32, #tpu.memory_space<vmem>>, vector<1x1x2x128xf32>
    %48 = vector.shape_cast %47 : vector<1x1x2x128xf32> to vector<2x128xf32>
    %49 = vector.shape_cast %46 : vector<2x128xf32> to vector<1x1x2x128xf32>
    tpu.vector_store %arg5[%c0_34, %c1_35, %c0_36, %c0_37], %49 {strides = array<i32>} : memref<1x8x2x128xf32, #tpu.memory_space<vmem>>, vector<1x1x2x128xf32>,
    %c2_38 = arith.constant 2 : index
    %c0_39 = arith.constant 0 : index
    %50 = memref.load %arg3[%c2_38, %c0_39] : memref<8x4xf32, #tpu.memory_space<smem>>
    %51 = vector.broadcast %50 : f32 to vector<2x128xf32>
    %52 = arith.mulf %1, %51 : vector<2x128xf32>
    %c2_40 = arith.constant 2 : index
    %c1_41 = arith.constant 1 : index
    %53 = memref.load %arg3[%c2_40, %c1_41] : memref<8x4xf32, #tpu.memory_space<smem>>
    %54 = vector.broadcast %53 : f32 to vector<2x128xf32>
    %55 = arith.mulf %3, %54 : vector<2x128xf32>
    %56 = arith.addf %52, %55 : vector<2x128xf32>
    %c2_42 = arith.constant 2 : index
    %c2_43 = arith.constant 2 : index
    %57 = memref.load %arg3[%c2_42, %c2_43] : memref<8x4xf32, #tpu.memory_space<smem>>
    %58 = vector.broadcast %57 : f32 to vector<2x128xf32>
    %59 = arith.mulf %5, %58 : vector<2x128xf32>
    %60 = arith.addf %56, %59 : vector<2x128xf32>
    %c2_44 = arith.constant 2 : index
    %c3_45 = arith.constant 3 : index
    %61 = memref.load %arg3[%c2_44, %c3_45] : memref<8x4xf32, #tpu.memory_space<smem>>
    %62 = vector.broadcast %61 : f32 to vector<2x128xf32>
    %63 = arith.mulf %7, %62 : vector<2x128xf32>
    %64 = arith.addf %60, %63 : vector<2x128xf32>
    %c2_46 = arith.constant 2 : index
    %65 = memref.load %arg4[%c2_46] : memref<8xf32, #tpu.memory_space<smem>>
    %66 = vector.broadcast %65 : f32 to vector<2x128xf32>
    %67 = arith.addf %64, %66 : vector<2x128xf32>
    %c0_47 = arith.constant 0 : index
    %c2_48 = arith.constant 2 : index
    %c0_49 = arith.constant 0 : index
    %c0_50 = arith.constant 0 : index
    %68 = vector.load %arg5[%c0_47, %c2_48, %c0_49, %c0_50] : memref<1x8x2x128xf32, #tpu.memory_space<vmem>>, vector<1x1x2x128xf32>
    %69 = vector.shape_cast %68 : vector<1x1x2x128xf32> to vector<2x128xf32>
    %70 = vector.shape_cast %67 : vector<2x128xf32> to vector<1x1x2x128xf32>
    tpu.vector_store %arg5[%c0_47, %c2_48, %c0_49, %c0_50], %70 {strides = array<i32>} : memref<1x8x2x128xf32, #tpu.memory_space<vmem>>, vector<1x1x2x128xf32>,
    %c3_51 = arith.constant 3 : index
    %c0_52 = arith.constant 0 : index
    %71 = memref.load %arg3[%c3_51, %c0_52] : memref<8x4xf32, #tpu.memory_space<smem>>
    %72 = vector.broadcast %71 : f32 to vector<2x128xf32>
    %73 = arith.mulf %1, %72 : vector<2x128xf32>
    %c3_53 = arith.constant 3 : index
    %c1_54 = arith.constant 1 : index
    %74 = memref.load %arg3[%c3_53, %c1_54] : memref<8x4xf32, #tpu.memory_space<smem>>
    %75 = vector.broadcast %74 : f32 to vector<2x128xf32>
    %76 = arith.mulf %3, %75 : vector<2x128xf32>
    %77 = arith.addf %73, %76 : vector<2x128xf32>
    %c3_55 = arith.constant 3 : index
    %c2_56 = arith.constant 2 : index
    %78 = memref.load %arg3[%c3_55, %c2_56] : memref<8x4xf32, #tpu.memory_space<smem>>
    %79 = vector.broadcast %78 : f32 to vector<2x128xf32>
    %80 = arith.mulf %5, %79 : vector<2x128xf32>
    %81 = arith.addf %77, %80 : vector<2x128xf32>
    %c3_57 = arith.constant 3 : index
    %c3_58 = arith.constant 3 : index
    %82 = memref.load %arg3[%c3_57, %c3_58] : memref<8x4xf32, #tpu.memory_space<smem>>
    %83 = vector.broadcast %82 : f32 to vector<2x128xf32>
    %84 = arith.mulf %7, %83 : vector<2x128xf32>
    %85 = arith.addf %81, %84 : vector<2x128xf32>
    %c3_59 = arith.constant 3 : index
    %86 = memref.load %arg4[%c3_59] : memref<8xf32, #tpu.memory_space<smem>>
    %87 = vector.broadcast %86 : f32 to vector<2x128xf32>
    %88 = arith.addf %85, %87 : vector<2x128xf32>
    %c0_60 = arith.constant 0 : index
    %c3_61 = arith.constant 3 : index
    %c0_62 = arith.constant 0 : index
    %c0_63 = arith.constant 0 : index
    %89 = vector.load %arg5[%c0_60, %c3_61, %c0_62, %c0_63] : memref<1x8x2x128xf32, #tpu.memory_space<vmem>>, vector<1x1x2x128xf32>
    %90 = vector.shape_cast %89 : vector<1x1x2x128xf32> to vector<2x128xf32>
    %91 = vector.shape_cast %88 : vector<2x128xf32> to vector<1x1x2x128xf32>
    tpu.vector_store %arg5[%c0_60, %c3_61, %c0_62, %c0_63], %91 {strides = array<i32>} : memref<1x8x2x128xf32, #tpu.memory_space<vmem>>, vector<1x1x2x128xf32>,
    %c4 = arith.constant 4 : index
    %c0_64 = arith.constant 0 : index
    %92 = memref.load %arg3[%c4, %c0_64] : memref<8x4xf32, #tpu.memory_space<smem>>
    %93 = vector.broadcast %92 : f32 to vector<2x128xf32>
    %94 = arith.mulf %1, %93 : vector<2x128xf32>
    %c4_65 = arith.constant 4 : index
    %c1_66 = arith.constant 1 : index
    %95 = memref.load %arg3[%c4_65, %c1_66] : memref<8x4xf32, #tpu.memory_space<smem>>
    %96 = vector.broadcast %95 : f32 to vector<2x128xf32>
    %97 = arith.mulf %3, %96 : vector<2x128xf32>
    %98 = arith.addf %94, %97 : vector<2x128xf32>
    %c4_67 = arith.constant 4 : index
    %c2_68 = arith.constant 2 : index
    %99 = memref.load %arg3[%c4_67, %c2_68] : memref<8x4xf32, #tpu.memory_space<smem>>
    %100 = vector.broadcast %99 : f32 to vector<2x128xf32>
    %101 = arith.mulf %5, %100 : vector<2x128xf32>
    %102 = arith.addf %98, %101 : vector<2x128xf32>
    %c4_69 = arith.constant 4 : index
    %c3_70 = arith.constant 3 : index
    %103 = memref.load %arg3[%c4_69, %c3_70] : memref<8x4xf32, #tpu.memory_space<smem>>
    %104 = vector.broadcast %103 : f32 to vector<2x128xf32>
    %105 = arith.mulf %7, %104 : vector<2x128xf32>
    %106 = arith.addf %102, %105 : vector<2x128xf32>
    %c4_71 = arith.constant 4 : index
    %107 = memref.load %arg4[%c4_71] : memref<8xf32, #tpu.memory_space<smem>>
    %108 = vector.broadcast %107 : f32 to vector<2x128xf32>
    %109 = arith.addf %106, %108 : vector<2x128xf32>
    %c0_72 = arith.constant 0 : index
    %c4_73 = arith.constant 4 : index
    %c0_74 = arith.constant 0 : index
    %c0_75 = arith.constant 0 : index
    %110 = vector.load %arg5[%c0_72, %c4_73, %c0_74, %c0_75] : memref<1x8x2x128xf32, #tpu.memory_space<vmem>>, vector<1x1x2x128xf32>
    %111 = vector.shape_cast %110 : vector<1x1x2x128xf32> to vector<2x128xf32>
    %112 = vector.shape_cast %109 : vector<2x128xf32> to vector<1x1x2x128xf32>
    tpu.vector_store %arg5[%c0_72, %c4_73, %c0_74, %c0_75], %112 {strides = array<i32>} : memref<1x8x2x128xf32, #tpu.memory_space<vmem>>, vector<1x1x2x128xf32>,
    %c5 = arith.constant 5 : index
    %c0_76 = arith.constant 0 : index
    %113 = memref.load %arg3[%c5, %c0_76] : memref<8x4xf32, #tpu.memory_space<smem>>
    %114 = vector.broadcast %113 : f32 to vector<2x128xf32>
    %115 = arith.mulf %1, %114 : vector<2x128xf32>
    %c5_77 = arith.constant 5 : index
    %c1_78 = arith.constant 1 : index
    %116 = memref.load %arg3[%c5_77, %c1_78] : memref<8x4xf32, #tpu.memory_space<smem>>
    %117 = vector.broadcast %116 : f32 to vector<2x128xf32>
    %118 = arith.mulf %3, %117 : vector<2x128xf32>
    %119 = arith.addf %115, %118 : vector<2x128xf32>
    %c5_79 = arith.constant 5 : index
    %c2_80 = arith.constant 2 : index
    %120 = memref.load %arg3[%c5_79, %c2_80] : memref<8x4xf32, #tpu.memory_space<smem>>
    %121 = vector.broadcast %120 : f32 to vector<2x128xf32>
    %122 = arith.mulf %5, %121 : vector<2x128xf32>
    %123 = arith.addf %119, %122 : vector<2x128xf32>
    %c5_81 = arith.constant 5 : index
    %c3_82 = arith.constant 3 : index
    %124 = memref.load %arg3[%c5_81, %c3_82] : memref<8x4xf32, #tpu.memory_space<smem>>
    %125 = vector.broadcast %124 : f32 to vector<2x128xf32>
    %126 = arith.mulf %7, %125 : vector<2x128xf32>
    %127 = arith.addf %123, %126 : vector<2x128xf32>
    %c5_83 = arith.constant 5 : index
    %128 = memref.load %arg4[%c5_83] : memref<8xf32, #tpu.memory_space<smem>>
    %129 = vector.broadcast %128 : f32 to vector<2x128xf32>
    %130 = arith.addf %127, %129 : vector<2x128xf32>
    %c0_84 = arith.constant 0 : index
    %c5_85 = arith.constant 5 : index
    %c0_86 = arith.constant 0 : index
    %c0_87 = arith.constant 0 : index
    %131 = vector.load %arg5[%c0_84, %c5_85, %c0_86, %c0_87] : memref<1x8x2x128xf32, #tpu.memory_space<vmem>>, vector<1x1x2x128xf32>
    %132 = vector.shape_cast %131 : vector<1x1x2x128xf32> to vector<2x128xf32>
    %133 = vector.shape_cast %130 : vector<2x128xf32> to vector<1x1x2x128xf32>
    tpu.vector_store %arg5[%c0_84, %c5_85, %c0_86, %c0_87], %133 {strides = array<i32>} : memref<1x8x2x128xf32, #tpu.memory_space<vmem>>, vector<1x1x2x128xf32>,
    %c6 = arith.constant 6 : index
    %c0_88 = arith.constant 0 : index
    %134 = memref.load %arg3[%c6, %c0_88] : memref<8x4xf32, #tpu.memory_space<smem>>
    %135 = vector.broadcast %134 : f32 to vector<2x128xf32>
    %136 = arith.mulf %1, %135 : vector<2x128xf32>
    %c6_89 = arith.constant 6 : index
    %c1_90 = arith.constant 1 : index
    %137 = memref.load %arg3[%c6_89, %c1_90] : memref<8x4xf32, #tpu.memory_space<smem>>
    %138 = vector.broadcast %137 : f32 to vector<2x128xf32>
    %139 = arith.mulf %3, %138 : vector<2x128xf32>
    %140 = arith.addf %136, %139 : vector<2x128xf32>
    %c6_91 = arith.constant 6 : index
    %c2_92 = arith.constant 2 : index
    %141 = memref.load %arg3[%c6_91, %c2_92] : memref<8x4xf32, #tpu.memory_space<smem>>
    %142 = vector.broadcast %141 : f32 to vector<2x128xf32>
    %143 = arith.mulf %5, %142 : vector<2x128xf32>
    %144 = arith.addf %140, %143 : vector<2x128xf32>
    %c6_93 = arith.constant 6 : index
    %c3_94 = arith.constant 3 : index
    %145 = memref.load %arg3[%c6_93, %c3_94] : memref<8x4xf32, #tpu.memory_space<smem>>
    %146 = vector.broadcast %145 : f32 to vector<2x128xf32>
    %147 = arith.mulf %7, %146 : vector<2x128xf32>
    %148 = arith.addf %144, %147 : vector<2x128xf32>
    %c6_95 = arith.constant 6 : index
    %149 = memref.load %arg4[%c6_95] : memref<8xf32, #tpu.memory_space<smem>>
    %150 = vector.broadcast %149 : f32 to vector<2x128xf32>
    %151 = arith.addf %148, %150 : vector<2x128xf32>
    %c0_96 = arith.constant 0 : index
    %c6_97 = arith.constant 6 : index
    %c0_98 = arith.constant 0 : index
    %c0_99 = arith.constant 0 : index
    %152 = vector.load %arg5[%c0_96, %c6_97, %c0_98, %c0_99] : memref<1x8x2x128xf32, #tpu.memory_space<vmem>>, vector<1x1x2x128xf32>
    %153 = vector.shape_cast %152 : vector<1x1x2x128xf32> to vector<2x128xf32>
    %154 = vector.shape_cast %151 : vector<2x128xf32> to vector<1x1x2x128xf32>
    tpu.vector_store %arg5[%c0_96, %c6_97, %c0_98, %c0_99], %154 {strides = array<i32>} : memref<1x8x2x128xf32, #tpu.memory_space<vmem>>, vector<1x1x2x128xf32>,
    %c7 = arith.constant 7 : index
    %c0_100 = arith.constant 0 : index
    %155 = memref.load %arg3[%c7, %c0_100] : memref<8x4xf32, #tpu.memory_space<smem>>
    %156 = vector.broadcast %155 : f32 to vector<2x128xf32>
    %157 = arith.mulf %1, %156 : vector<2x128xf32>
    %c7_101 = arith.constant 7 : index
    %c1_102 = arith.constant 1 : index
    %158 = memref.load %arg3[%c7_101, %c1_102] : memref<8x4xf32, #tpu.memory_space<smem>>
    %159 = vector.broadcast %158 : f32 to vector<2x128xf32>
    %160 = arith.mulf %3, %159 : vector<2x128xf32>
    %161 = arith.addf %157, %160 : vector<2x128xf32>
    %c7_103 = arith.constant 7 : index
    %c2_104 = arith.constant 2 : index
    %162 = memref.load %arg3[%c7_103, %c2_104] : memref<8x4xf32, #tpu.memory_space<smem>>
    %163 = vector.broadcast %162 : f32 to vector<2x128xf32>
    %164 = arith.mulf %5, %163 : vector<2x128xf32>
    %165 = arith.addf %161, %164 : vector<2x128xf32>
    %c7_105 = arith.constant 7 : index
    %c3_106 = arith.constant 3 : index
    %166 = memref.load %arg3[%c7_105, %c3_106] : memref<8x4xf32, #tpu.memory_space<smem>>
    %167 = vector.broadcast %166 : f32 to vector<2x128xf32>
    %168 = arith.mulf %7, %167 : vector<2x128xf32>
    %169 = arith.addf %165, %168 : vector<2x128xf32>
    %c7_107 = arith.constant 7 : index
    %170 = memref.load %arg4[%c7_107] : memref<8xf32, #tpu.memory_space<smem>>
    %171 = vector.broadcast %170 : f32 to vector<2x128xf32>
    %172 = arith.addf %169, %171 : vector<2x128xf32>
    %c0_108 = arith.constant 0 : index
    %c7_109 = arith.constant 7 : index
    %c0_110 = arith.constant 0 : index
    %c0_111 = arith.constant 0 : index
    %173 = vector.load %arg5[%c0_108, %c7_109, %c0_110, %c0_111] : memref<1x8x2x128xf32, #tpu.memory_space<vmem>>, vector<1x1x2x128xf32>
    %174 = vector.shape_cast %173 : vector<1x1x2x128xf32> to vector<2x128xf32>
    %175 = vector.shape_cast %172 : vector<2x128xf32> to vector<1x1x2x128xf32>
    tpu.vector_store %arg5[%c0_108, %c7_109, %c0_110, %c0_111], %175 {strides = array<i32>} : memref<1x8x2x128xf32, #tpu.memory_space<vmem>>, vector<1x1x2x128xf32>,
    return
  }
  func.func @transform_0(%arg0: i32, %arg1: i32) -> (i32, i32, i32, i32) {
    %c0_i32 = arith.constant 0 : i32
    %c0_i32_0 = arith.constant 0 : i32
    %c0_i32_1 = arith.constant 0 : i32
    return %arg0, %c0_i32, %arg1, %c0_i32_0 : i32, i32, i32, i32
  }
  func.func @transform_1(%arg0: i32, %arg1: i32) -> (i32, i32) {
    %c0_i32 = arith.constant 0 : i32
    %c0_i32_0 = arith.constant 0 : i32
    %c0_i32_1 = arith.constant 0 : i32
    return %c0_i32, %c0_i32_0 : i32, i32
  }
  func.func @transform_2(%arg0: i32, %arg1: i32) -> i32 {
    %c0_i32 = arith.constant 0 : i32
    %c0_i32_0 = arith.constant 0 : i32
    return %c0_i32 : i32
  }
  func.func @transform_3(%arg0: i32, %arg1: i32) -> (i32, i32, i32, i32) {
    %c0_i32 = arith.constant 0 : i32
    %c0_i32_0 = arith.constant 0 : i32
    %c0_i32_1 = arith.constant 0 : i32
    return %arg0, %c0_i32, %arg1, %c0_i32_0 : i32, i32, i32, i32
  }
}

</mosaic_0001>

<bundles_post_ra>
// kernel: tpu_custom_call.1
= control target key start
LH: loop header
LB: loop body
LE: loop exit
PB: predicated region body
PF: predicated region fallthrough
CT: control target
= control target key end

     0   :  { %s1225_s0 = inlined_call_operand.hbm [shape: f32[2,4,2,128], index: 0, kind: input, shape index: {}]   ;;  %s1226_s1 = inlined_call_operand.vmem [shape: f32[8,4], index: 1, kind: input, shape index: {}]   ;;  %s1227_s2 = inlined_call_operand.vmem [shape: f32[8], index: 2, kind: input, shape index: {}]   ;;  %s1228_s3 = inlined_call_operand.hbm [shape: f32[2,8,2,128], index: 3, kind: output, shape index: {}]  }
   0x1   :  { %1235 = sst [smem:[#allocation14_spill]] %s1225_s0 }
   0x2   :  { %8 = vsyncpa [#allocation3], 0 }
   0x3   :  { %10 = vsyncpa [#allocation3 + $0x1], 0 }
   0x4   :  { %11 = vsyncpa [#allocation5], 0 }
   0x5   :  { %12 = vsyncpa [#allocation8], 0 }
   0x6   :  { %13 = vsyncpa [#allocation4], 0 }
   0x7   :  { %15 = vsyncpa [#allocation4 + $0x1], 0  ;;  %s857_s12 = smov 0   ;;  %s859_s13 = smov 0  }
   0x8   :  { %s861_s14 = smov 0   ;;  %s863_s15 = smov 0  }
   0x9   :  { %s865_s16 = smov 0   ;;  %s867_s17 = smov 0  }
   0xa LB: > { %s521_s18 = sadd.s32 4294967295, %s827_s17   ;;  %s522_s19 = sadd.s32 4294967294, %s827_s17   ;;  %s827_s17 = sphi %s867_s17, %s21_s17   ;;  %s823_s16 = sphi %s865_s16, %s1257_s16   ;;  %s819_s15 = sphi %s863_s15, %s1256_s15   ;;  %s815_s14 = sphi %s861_s14, %s1255_s14   ;;  %s811_s13 = sphi %s859_s13, %s1254_s13   ;;  %s807_s12 = sphi %s857_s12, %s1253_s12  }
   0xb   : > { %s42_s20 = sadd.s32 1, %s815_s14  ;;  %p49_p0 = scmp.ne.s32.totalorder %s815_s14, %s811_s13 }
   0xc   : > { %p50_p1 = scmp.eq.s32.totalorder %s827_s17, 0  ;;  %p55_p2 = scmp.ne.s32.totalorder %s811_s13, %s807_s12 }
   0xd   : > { %p895_p3 = scmp.eq.s32.totalorder %s521_s18, 0  ;;  %p123_p4 = scmp.eq.s32.totalorder %s521_s18, 1 }
   0xe   : > { %p899_p5 = por %p50_p1, %p49_p0  ;;  %p129_p6 = scmp.eq.s32.totalorder %s522_s19, 1 }
   0xf   : > { %s1236_s21 = scalar_select %p895_p3, 1, 0 }
  0x10   : > { %p905_p7 = por %p895_p3, %p55_p2  ;;  %p909_p8 = por %p123_p4, %p49_p0 }
  0x11   : > { %p913_p9 = por %p129_p6, %p55_p2  ;;  %p523_p10 = scmp.ge.s32.totalorder %s827_s17, 1 }
  0x12   : > { %s1238_s23 = scalar_select %p905_p7, 1, 0 }
  0x13   : > { %s1239_s24 = scalar_select %p909_p8, 1, 0 }
  0x14   : > { %s1240_s25 = scalar_select %p913_p9, 1, 0 }
  0x15   : > { %p136_p11 = scmp.lt.s32.totalorder %s827_s17, 3  ;;  %s149_s28 = sshll.u32 %s1226_s1, 4  ;;  %s150_s28 = int_to_ptr.vmem [resolvable:$true] %s149_s28 }
  0x16   : > { %p619_p0 = scmp.lt.s32.totalorder %s827_s17, 2  ;;  %s160_s5 = sshll.u32 %s1227_s2, 4  ;;  %s161_s5 = int_to_ptr.vmem [resolvable:$true] %s160_s5 }
  0x17   : > { %p922_p12 = pnand %p523_p10, %p136_p11  ;;  %s677_s8 = scalar_lea.vmem %s150_s28, 128 }
  0x18   : > { %p935_p2 = pnand %p619_p0, %p899_p5  ;;  %p678_p6 = scmp.ne.s32.totalorder %s150_s28, %s677_s8 }
  0x19   : > { %s1241_s29 = scalar_select %p922_p12, 1, 0 }
  0x1a   : > { %p602_p1 = pneg %p922_p12  ;;  %p685_p9 = scmp.lt.s32.totalorder %s150_s28, %s150_s28 }
  0x1b   : > { %s1242_s6 = scalar_select %p935_p2, 1, 0 }
  0x1c   : > { %p941_p4 = pnand %p602_p1, %p895_p3  ;;  %p686_p8 = scmp.lt.s32.totalorder %s677_s8, %s677_s8 }
  0x1e   : > { %p679_p10 = pneg %p941_p4  ;;  %p687_p7 = por %p686_p8, %p685_p9 }
  0x20   : > { %p680_p11 = pnand %p679_p10, %p678_p6 }
  0x22   : > { %p681_p13 = pneg %p680_p11 }
  0x24   : > { %p688_p5 = pnand %p687_p7, %p681_p13 }
  0x26   : > { %691 = shalt.err (!%p688_p5)
}
  0x27   : > { %s829_s9 = smov [#allocation6]   ;;  %s692_s10 = scalar_lea.vmem %s161_s5, 16 }
  0x28   : > { %605 = dma.vmem_to_smem (!%p941_p4), %s150_s28, 128, %s829_s9, [#allocation5]  }
  0x29   : > { %p693_p0 = scmp.ne.s32.totalorder %s161_s5, %s692_s10  ;;  %p700_p12 = scmp.lt.s32.totalorder %s161_s5, %s161_s5 }
  0x2a   : > { %p701_p2 = scmp.lt.s32.totalorder %s692_s10, %s692_s10 }
  0x2b   : > { %p695_p1 = pnand %p693_p0, %p679_p10 }
  0x2c   : > { %p702_p6 = por %p701_p2, %p700_p12 }
  0x2d   : > { %p696_p3 = pneg %p695_p1 }
  0x2f   : > { %p703_p11 = pnand %p702_p6, %p696_p3 }
  0x31   : > { %706 = shalt.err (!%p703_p11)
}
  0x32   : > { %s830_s11 = smov [#allocation7]   ;;  %s33_s18 = sadd.s32 1, %s823_s16 }
  0x33   : > { %608 = dma.vmem_to_smem (!%p941_p4), %s161_s5, 16, %s830_s11, [#allocation8]  }
  0x34   : > { %s171_s19 = sand.u32 1, %s815_s14   ;;  %p35_p7 = scmp.ge.s32.totalorder %s33_s18, 2 }
  0x35   : > { %s527_s22 = sshll.u32 %s171_s19, 3  ;;  %s588_s26 = sshll.u32 %s823_s16, 7 }
  0x36   : > { %s1259_s18 = smov (%p35_p7, %s33_s18), 0  ;;  %s1244_s0 = sld [smem:[#allocation14_spill]] }
  0x37   : > { %s37_s4 = ssub.s32 %s823_s16, %s1259_s18  ;;  %s175_s5 = scalar_lea.vmem [#allocation2], %s527_s22 }
  0x38   : > { %s183_s7 = sshll.u32 %s175_s5, 4  ;;  %p40_p3 = scmp.eq.s32.totalorder %s37_s4, 0  ;;  %s963_s7 = int_to_ptr.vmem [resolvable:$true] %s183_s7 }
  0x39   : > { %s970_s9 = scalar_lea.sflag [#allocation3], %s171_s19  ;;  %p1245_p9 = scmp.ne.s32.totalorder %s1242_s6, 0 }
  0x3a   : > { %s968_s8 = scalar_select %p40_p3, %s815_s14, %s42_s20  }
  0x3b   : > { %p709_p12 = pneg %p1245_p9 }
  0x3c   : > { %s959_s30 = scalar_lea.hbm %s1244_s0, %s588_s26  ;;  %s712_s22 = scalar_lea.hbm %s1244_s0, 256 }
  0x3d   : > { %s707_s10 = scalar_lea.hbm %s959_s30, 128  ;;  %p713_p4 = scmp.lt.u32.totalorder %s959_s30, %s1244_s0 }
  0x3e   : > { %p708_p8 = scmp.ne.s32.totalorder %s959_s30, %s707_s10  ;;  %p714_p10 = scmp.lt.u32.totalorder %s712_s22, %s707_s10 }
  0x3f   : > { %p716_p0 = scmp.lt.u32.totalorder %s707_s10, %s959_s30 }
  0x40   : > { %p710_p13 = pnand %p709_p12, %p708_p8  ;;  %p715_p5 = por %p714_p10, %p713_p4 }
  0x42   : > { %p711_p2 = pneg %p710_p13  ;;  %p717_p1 = por %p716_p0, %p715_p5 }
  0x44   : > { %p718_p6 = pnand %p717_p1, %p711_p2 }
  0x46   : > { %721 = shalt.err (!%p718_p6)
}
  0x47   : > { %s722_s20 = scalar_lea.vmem %s963_s7, 128  ;;  %s831_s19 = smov [#allocation2]  }
  0x48   : > { %p723_p11 = scmp.ne.s32.totalorder %s963_s7, %s722_s20  ;;  %s727_s4 = sshll.u32 %s831_s19, 4  ;;  %s728_s4 = int_to_ptr.vmem [resolvable:$false] %s727_s4 }
  0x49   : > { %s729_s5 = scalar_lea.vmem %s728_s4, 256  ;;  %p730_p8 = scmp.lt.s32.totalorder %s963_s7, %s728_s4 }
  0x4a   : > { %p725_p7 = pnand %p723_p11, %p709_p12  ;;  %p731_p13 = scmp.lt.s32.totalorder %s729_s5, %s722_s20 }
  0x4c   : > { %p726_p3 = pneg %p725_p7  ;;  %p732_p4 = por %p731_p13, %p730_p8 }
  0x4e   : > { %p733_p10 = pnand %p732_p4, %p726_p3 }
  0x50   : > { %736 = shalt.err (!%p733_p10)
}
  0x51   : > { %s832_s10 = smov 32   ;;  %s833_s11 = smov 2  }
  0x52   : > { %612 = dma.hbm_to_vmem [thread:$0]  (!%p1245_p9), %s959_s30, 128, %s963_s7, %s970_s9, %s832_s10, %s832_s10, %s833_s11  }
  0x53   : > { %p1246_p12 = scmp.ne.s32.totalorder %s1241_s29, 0 }
  0x54   : > { %s1001_s26 = sand.u32 (!%p1246_p12), 1, %s811_s13   ;;  %p1247_p2 = scmp.ne.s32.totalorder (!%p1246_p12), %s1238_s23, 0 }
  0x55   : > { %195 = sbr.rel (%p1246_p12) target bundleno = 154 (0x9a), region = 32  ;;  %s531_s22 = sshll.u32 (!%p1246_p12), %s1001_s26, 3 }
  0x56   : > { %s198_s27 = scalar_lea.sflag (!%p1246_p12), [#allocation3], %s1001_s26  ;;  %s201_s28 = scalar_lea.vmem (!%p1246_p12), [#allocation2], %s531_s22 }
  0x5c   : > { %790 = dma.done.wait (%p1247_p2), %s198_s27, 128  }
  0x5d   : > { %792 = vsyncadd (%p1247_p2), %s198_s27, 4294967168  ;;  %p1248_p5 = scmp.ne.s32.totalorder %s1236_s21, 0 }
  0x5f   : > { %794 = dma.done.wait (%p1248_p5), [#allocation5], 128  }
  0x60   : > { %796 = vsyncadd (%p1248_p5), [#allocation5], 4294967168 }
  0x61   : > { %798 = dma.done.wait (%p1248_p5), [#allocation8], 16  }
  0x62   : > { %800 = vsyncadd (%p1248_p5), [#allocation8], 4294967280 }
  0x63   : > { %214 = sfence }
  0x64   : > { %s240_s29 = sld [smem:[#allocation6]]  ;;  %s538_s6 = sld [smem:[#allocation6 + $0x1]]  ;;  %v1017_v0 = vld [vmem:[%s201_s28] sm:$0x3]  ;;  %v1021_v1 = vld [vmem:[%s201_s28 + $0x2] sm:$0x3] }
  0x65   : > { %s539_s30 = sld [smem:[#allocation6 + $0x2]]  ;;  %s540_s7 = sld [smem:[#allocation6 + $0x3]]  ;;  %v1023_v2 = vld [vmem:[%s201_s28 + $0x4] sm:$0x3]  ;;  %v1029_v3 = vld [vmem:[%s201_s28 + $0x6] sm:$0x3] }
  0x66   : > { %s1019_s23 = sld [smem:[#allocation7]]  ;;  %s542_s20 = sld [smem:[#allocation6 + $0x81]] }
  0x67   : > { %s541_s9 = sld [smem:[#allocation6 + $0x80]]  ;;  %s543_s19 = sld [smem:[#allocation6 + $0x82]] }
  0x68   : > { %s1025_s4 = sld [smem:[#allocation6 + $0x83]]  ;;  %s1027_s21 = sld [smem:[#allocation7 + $0x1]] }
  0x69   : > { %s1031_s5 = sld [smem:[#allocation6 + $0x100]]  ;;  %s1033_s10 = sld [smem:[#allocation6 + $0x101]] }
  0x6a   : > { %v241_v4 = vstv %s240_s29  ;;  %v244_v5 = vstv %s538_s6  ;;  %s1037_s11 = sld [smem:[#allocation6 + $0x102]]  ;;  %s1039_s22 = sld [smem:[#allocation6 + $0x103]] }
  0x6b   : > { %v242_v6 = vmul.f32 %v241_v4, %v1017_v0  ;;  %v245_v7 = vmul.f32 %v1021_v1, %v244_v5  ;;  %v248_v8 = vstv %s539_s30  ;;  %v252_v9 = vstv %s540_s7  ;;  %s1043_s28 = sld [smem:[#allocation6 + $0x180]]  ;;  %s1046_s29 = sld [smem:[#allocation6 + $0x181]] }
  0x6c   : > { %v249_v10 = vmul.f32 %v1023_v2, %v248_v8  ;;  %v253_v12 = vmul.f32 %v1029_v3, %v252_v9  ;;  %s1048_s6 = sld [smem:[#allocation6 + $0x182]]  ;;  %v263_v15 = vstv %s542_s20  ;;  %s1053_s7 = sld [smem:[#allocation6 + $0x183]]  ;;  %v256_v21 = vstv %s1019_s23 }
  0x6d   : > { %v246_v11 = vadd.f32 %v245_v7, %v242_v6  ;;  %v260_v13 = vstv %s541_s9  ;;  %v267_v16 = vstv %s543_s19  ;;  %s1051_s30 = sld [smem:[#allocation7 + $0x2]]  ;;  %v264_v18 = vmul.f32 %v1021_v1, %v263_v15  ;;  %s1058_s9 = sld [smem:[#allocation6 + $0x200]] }
  0x6e   : > { %v261_v14 = vmul.f32 %v260_v13, %v1017_v0  ;;  %v268_v19 = vmul.f32 %v1023_v2, %v267_v16  ;;  %v271_v20 = vstv %s1025_s4  ;;  %s1060_s27 = sld [smem:[#allocation6 + $0x201]]  ;;  %s1066_s20 = sld [smem:[#allocation6 + $0x202]]  ;;  %v275_v29 = vstv %s1027_s21 }
  0x6f   : > { %v250_v17 = vadd.f32 %v249_v10, %v246_v11  ;;  %v272_v22 = vmul.f32 %v1029_v3, %v271_v20  ;;  %v280_v23 = vstv %s1031_s5  ;;  %v283_v24 = vstv %s1033_s10  ;;  %s1068_s19 = sld [smem:[#allocation6 + $0x203]]  ;;  %s1078_s23 = sld [smem:[#allocation6 + $0x280]] }
  0x70   : > { %v265_v26 = vadd.f32 %v264_v18, %v261_v14  ;;  %v281_v27 = vmul.f32 %v280_v23, %v1017_v0  ;;  %v284_v28 = vmul.f32 %v1021_v1, %v283_v24  ;;  %s1072_s4 = sld [smem:[#allocation7 + $0x3]]  ;;  %v287_v30 = vstv %s1037_s11  ;;  %s1080_s5 = sld [smem:[#allocation6 + $0x281]] }
  0x71   : > { %v254_v25 = vadd.f32 %v253_v12, %v250_v17  ;;  %v291_v31 = vstv %s1039_s22  ;;  %v300_v32 = vstv %s1043_s28  ;;  %v288_v36 = vmul.f32 %v1023_v2, %v287_v30  ;;  %s1083_s10 = sld [smem:[#allocation6 + $0x282]]  ;;  %s1089_s21 = sld [smem:[#allocation7 + $0x4]] }
  0x72   : > { %v269_v34 = vadd.f32 %v268_v19, %v265_v26  ;;  %v285_v35 = vadd.f32 %v284_v28, %v281_v27  ;;  %v292_v37 = vmul.f32 %v1029_v3, %v291_v31  ;;  %v301_v38 = vmul.f32 %v300_v32, %v1017_v0  ;;  %s1091_s11 = sld [smem:[#allocation6 + $0x283]]  ;;  %s1249_s22 = sshll.u32 %s1001_s26, 4 }
  0x73   : > { %v257_v33 = vadd.f32 %v256_v21, %v254_v25  ;;  %v303_v39 = vstv %s1046_s29  ;;  %v307_v40 = vstv %s1048_s6  ;;  %s1095_s28 = scalar_lea.vmem [#allocation9], %s1249_s22  ;;  %s1100_s0 = sld [smem:[#allocation6 + $0x300]]  ;;  %v295_v45 = vstv %s1051_s30 }
  0x74   : > { %v273_v41 = vadd.f32 %v272_v22, %v269_v34  ;;  %v289_v42 = vadd.f32 %v288_v36, %v285_v35  ;;  %v304_v43 = vmul.f32 %v1021_v1, %v303_v39  ;;  %v308_v44 = vmul.f32 %v1023_v2, %v307_v40  ;;  %s1106_s29 = sld [smem:[#allocation6 + $0x301]]  ;;  %s1108_s6 = sld [smem:[#allocation6 + $0x302]] }
  0x75   : > { %258 = vst [vmem:[%s1095_s28] sm:$0x3] %v257_v33  ;;  %v311_v46 = vstv %s1053_s7  ;;  %v320_v47 = vstv %s1058_s9  ;;  %v323_v48 = vstv %s1060_s27  ;;  %s1111_s22 = sld [smem:[#allocation6 + $0x303]]  ;;  %s1117_s27 = sld [smem:[#allocation7 + $0x5]] }
  0x76   : > { %v276_v49 = vadd.f32 %v275_v29, %v273_v41  ;;  %v293_v50 = vadd.f32 %v292_v37, %v289_v42  ;;  %v305_v51 = vadd.f32 %v304_v43, %v301_v38  ;;  %v312_v52 = vmul.f32 %v1029_v3, %v311_v46  ;;  %s1119_s30 = sld [smem:[#allocation6 + $0x380]]  ;;  %s1124_s7 = sld [smem:[#allocation6 + $0x381]] }
  0x77   : > { %v321_v53 = vmul.f32 %v320_v47, %v1017_v0  ;;  %v324_v54 = vmul.f32 %v1021_v1, %v323_v48  ;;  %v327_v55 = vstv %s1066_s20  ;;  %v331_v56 = vstv %s1068_s19  ;;  %s1129_s9 = sld [smem:[#allocation6 + $0x382]]  ;;  %s1131_s20 = sld [smem:[#allocation6 + $0x383]] }
  0x78   : > { %546 = vst [vmem:[%s1095_s28 + $0x2] sm:$0x3] %v276_v49  ;;  %v296_v57 = vadd.f32 %v295_v45, %v293_v50  ;;  %v309_v58 = vadd.f32 %v308_v44, %v305_v51  ;;  %v315_v59 = vstv %s1072_s4  ;;  %v328_v60 = vmul.f32 %v1023_v2, %v327_v55  ;;  %s1140_s19 = sld [smem:[#allocation7 + $0x6]]  ;;  %s1151_s4 = sld [smem:[#allocation7 + $0x7]] }
  0x79   : > { %v325_v61 = vadd.f32 %v324_v54, %v321_v53  ;;  %v332_v62 = vmul.f32 %v1029_v3, %v331_v56  ;;  %v340_v63 = vstv %s1078_s23  ;;  %v343_v4 = vstv %s1080_s5  ;;  %s589_s23 = sshll.u32 %s819_s15, 8  ;;  %p1250_p0 = scmp.ne.s32.totalorder %s1239_s24, 0 }
  0x7a   : > { %552 = vst [vmem:[%s1095_s28 + $0x4] sm:$0x3] %v296_v57  ;;  %v313_v5 = vadd.f32 %v312_v52, %v309_v58  ;;  %v341_v6 = vmul.f32 %v340_v63, %v1017_v0  ;;  %v344_v7 = vmul.f32 %v1021_v1, %v343_v4  ;;  %v347_v8 = vstv %s1083_s10  ;;  %s834_s15 = smov [#allocation9]  }
  0x7b   : > { %v329_v9 = vadd.f32 %v328_v60, %v325_v61  ;;  %v335_v10 = vstv %s1089_s21  ;;  %v348_v11 = vmul.f32 %v1023_v2, %v347_v8  ;;  %v351_v12 = vstv %s1091_s11  ;;  %s1175_s21 = scalar_lea.hbm %s1228_s3, %s589_s23  ;;  %s400_s11 = scalar_lea.sflag [#allocation4], %s1001_s26 }
  0x7c   : > { %v316_v13 = vadd.f32 %v315_v59, %v313_v5  ;;  %v345_v14 = vadd.f32 %v344_v7, %v341_v6  ;;  %v352_v15 = vmul.f32 %v1029_v3, %v351_v12  ;;  %v360_v16 = vstv %s1100_s0  ;;  %s414_s0 = sshll.u32 %s1095_s28, 4  ;;  %s1169_s0 = int_to_ptr.vmem [resolvable:$true] %s414_s0 }
  0x7d   : > { %v333_v17 = vadd.f32 %v332_v62, %v329_v9  ;;  %v361_v18 = vmul.f32 %v360_v16, %v1017_v0  ;;  %v363_v19 = vstv %s1106_s29  ;;  %v367_v20 = vstv %s1108_s6  ;;  %s737_s29 = scalar_lea.vmem %s1169_s0, 256  ;;  %s741_s6 = sshll.u32 %s834_s15, 4  ;;  %s742_s6 = int_to_ptr.vmem [resolvable:$false] %s741_s6 }
  0x7e   : > { %558 = vst [vmem:[%s1095_s28 + $0x6] sm:$0x3] %v316_v13  ;;  %v349_v21 = vadd.f32 %v348_v11, %v345_v14  ;;  %v364_v22 = vmul.f32 %v1021_v1, %v363_v19  ;;  %v368_v23 = vmul.f32 %v1023_v2, %v367_v20  ;;  %v371_v24 = vstv %s1111_s22  ;;  %p738_p9 = scmp.ne.s32.totalorder %s1169_s0, %s737_s29  ;;  %s743_s22 = scalar_lea.vmem %s742_s6, 512 }
  0x7f   : > { %v336_v25 = vadd.f32 %v335_v10, %v333_v17  ;;  %v355_v26 = vstv %s1117_s27  ;;  %v372_v27 = vmul.f32 %v1029_v3, %v371_v24  ;;  %v380_v28 = vstv %s1119_s30  ;;  %p744_p11 = scmp.lt.s32.totalorder %s1169_s0, %s742_s6  ;;  %p745_p7 = scmp.lt.s32.totalorder %s743_s22, %s737_s29 }
  0x80   : > { %v353_v29 = vadd.f32 %v352_v15, %v349_v21  ;;  %v365_v30 = vadd.f32 %v364_v22, %v361_v18  ;;  %v381_v31 = vmul.f32 %v380_v28, %v1017_v0  ;;  %v383_v32 = vstv %s1124_s7  ;;  %p739_p1 = pnand %p738_p9, %p1250_p0 }
  0x81   : > { %564 = vst [vmem:[%s1095_s28 + $0x8] sm:$0x3] %v336_v25  ;;  %v384_v33 = vmul.f32 %v1021_v1, %v383_v32  ;;  %v387_v34 = vstv %s1129_s9  ;;  %v391_v35 = vstv %s1131_s20  ;;  %v375_v39 = vstv %s1140_s19  ;;  %p746_p3 = por %p745_p7, %p744_p11 }
  0x82   : > { %v356_v36 = vadd.f32 %v355_v26, %v353_v29  ;;  %v369_v37 = vadd.f32 %v368_v23, %v365_v30  ;;  %v388_v38 = vmul.f32 %v1023_v2, %v387_v34  ;;  %v392_v41 = vmul.f32 %v1029_v3, %v391_v35  ;;  %p740_p6 = pneg %p739_p1 }
  0x83   : > { %v385_v40 = vadd.f32 %v384_v33, %v381_v31  ;;  %v395_v43 = vstv %s1151_s4 }
  0x84   : > { %570 = vst [vmem:[%s1095_s28 + $0xa] sm:$0x3] %v356_v36  ;;  %v373_v0 = vadd.f32 %v372_v27, %v369_v37  ;;  %p747_p8 = pnand %p746_p3, %p740_p6 }
  0x85   : > { %v389_v42 = vadd.f32 %v388_v38, %v385_v40 }
  0x86   : > { %v376_v1 = vadd.f32 %v375_v39, %v373_v0 }
  0x87   : > { %v393_v44 = vadd.f32 %v392_v41, %v389_v42 }
  0x88   : > { %576 = vst [vmem:[%s1095_s28 + $0xc] sm:$0x3] %v376_v1 }
  0x89   : > { %v396_v2 = vadd.f32 %v395_v43, %v393_v44 }
  0x8b   : > { %582 = vst [vmem:[%s1095_s28 + $0xe] sm:$0x3] %v396_v2 }
  0x8c   : > { %750 = shalt.err (!%p747_p8)
}
  0x8d   : > { %s751_s28 = scalar_lea.hbm %s1175_s21, 256  ;;  %s755_s7 = scalar_lea.hbm %s1228_s3, 512 }
  0x8e   : > { %p752_p13 = scmp.ne.s32.totalorder %s1175_s21, %s751_s28  ;;  %p756_p12 = scmp.lt.u32.totalorder %s1175_s21, %s1228_s3 }
  0x8f   : > { %p757_p2 = scmp.lt.u32.totalorder %s755_s7, %s751_s28  ;;  %p759_p9 = scmp.lt.u32.totalorder %s751_s28, %s1175_s21 }
  0x90   : > { %p753_p4 = pnand %p752_p13, %p1250_p0 }
  0x91   : > { %p758_p5 = por %p757_p2, %p756_p12 }
  0x92   : > { %p754_p10 = pneg %p753_p4 }
  0x93   : > { %p760_p1 = por %p759_p9, %p758_p5 }
  0x95   : > { %p761_p6 = pnand %p760_p1, %p754_p10 }
  0x97   : > { %764 = shalt.err (!%p761_p6)
}
  0x98   : > { %s835_s19 = smov 32   ;;  %s836_s4 = smov 2  }
  0x99   : > { %600 = dma.vmem_to_hbm [thread:$0]  (%p1250_p0), %s1169_s0, 256, %s1175_s21, %s400_s11, %s835_s19, %s835_s19, %s836_s4  }
  0x9a PF: > { %s429_s23 = sand.u32 1, %s807_s12   ;;  %p1251_p11 = scmp.ne.s32.totalorder %s1240_s25, 0 }
  0x9b   : > { %p1252_p7 = scmp.ge.s32.totalorder %s827_s17, 2  ;;  %s430_s5 = scalar_lea.sflag [#allocation4], %s429_s23 }
  0x9d   : > { %p614_p3 = pnand %p1252_p7, %p1251_p11 }
  0x9f   : > { %802 = dma.done.wait (!%p614_p3), %s430_s5, 256  }
  0xa0   : > { %804 = vsyncadd (!%p614_p3), %s430_s5, 4294967040  ;;  %s21_s17 = sadd.s32 1, %s827_s17   ;;  %s1253_s12 = smov %s811_s13 }
  0xa1   : > { %p18_p8 = scmp.ge.s32.totalorder %s21_s17, 4   ;;  %s1254_s13 = smov %s815_s14 }
  0xa2   : > { %s1255_s14 = smov %s968_s8  ;;  %s1256_s15 = smov %s823_s16 }
  0xa3   : > { %s1257_s16 = smov %s1259_s18  ;;  %20 = sbr.rel (!%p18_p8) target bundleno = 10 (0xa), region = 96 }
  0xaa   :  { %435 = vsyncpa [#allocation3], 1 }
  0xab   :  { %437 = vsyncpa [#allocation3 + $0x1], 1 }
  0xac   :  { %438 = vsyncpa [#allocation4], 1 }
  0xad   :  { %440 = vsyncpa [#allocation4 + $0x1], 1 }
  0xae   :  { %441 = vsyncpa [#allocation5], 1 }
  0xaf   :  { %443 = vsyncpa [#allocation5 + $0x1], 1 }
  0xb0   :  { %444 = vsyncpa [#allocation8], 1 }

</bundles_post_ra>
